<compile_context>
chip_gen: v7x
topology: tpu7x:2x2x1
jax: 0.10.0
libtpu: 0.0.40
codegen_flags: <defaults>
</compile_context>

<pallas_src>
import functools

import jax
import jax.numpy as jnp
from jax import lax
from jax.experimental import pallas as pl
from jax.experimental.pallas import tpu as pltpu


def _round_up(x, m):
    return ((x + m - 1) // m) * m


def mlp_kernel(x_ref, w1_ref, b1_ref, w2_ref, b2_ref, o_ref):
    # x_ref:  (TB, D_in_p)    compute dtype (bf16)
    # w1_ref: (H_p, D_in_p)   PyTorch (out, in) layout -- no wrapper transpose
    # b1_ref: (1, H_p)        f32
    # w2_ref: (D_out_p, H_p)  PyTorch (out, in) layout
    # b2_ref: (1, D_out_p)    f32
    # o_ref:  (TB, D_out_p)   f32
    x = x_ref[...]
    # fc1: contract x's feature axis against w1's axis 1; f32 accumulation on MXU.
    h = lax.dot_general(
        x, w1_ref[...],
        dimension_numbers=(((1,), (1,)), ((), ())),
        preferred_element_type=jnp.float32,
    )
    h = jnp.maximum(h + b1_ref[...], 0.0)        # f32 bias + ReLU (VPU)
    h = h.astype(w2_ref.dtype)                   # bf16 operands for 2nd MXU pass
    out = lax.dot_general(
        h, w2_ref[...],
        dimension_numbers=(((1,), (1,)), ((), ())),
        preferred_element_type=jnp.float32,
    )
    o_ref[...] = (out + b2_ref[...]).astype(o_ref.dtype)


@functools.partial(jax.jit, static_argnames=("compute_dtype", "block_b"))
def mlp_gpt_forward(x, mask, w1, b1, w2, b2, *,
                    compute_dtype=jnp.bfloat16, block_b=256):
    """x: (B, D_in, 1). mask: ignored (unused in the reference forward).
    w1: (H, D_in), b1: (H,), w2: (D_out, H), b2: (D_out,)  -- PyTorch Linear layout.
    Returns (B, D_out) float32."""
    del mask  # unused, as in the PyTorch forward

    x2d = jnp.squeeze(x, axis=-1)                # (B, D_in)
    B, D_in = x2d.shape
    H = w1.shape[0]
    D_out = w2.shape[0]

    LANE = 128
    sub = 16 if compute_dtype == jnp.bfloat16 else 8   # sublane packing
    D_in_p = _round_up(D_in, LANE)
    H_p = _round_up(H, LANE)
    D_out_p = _round_up(D_out, LANE)

    # Batch tile: as large as reasonable, multiple of the sublane packing.
    TB = min(_round_up(B, sub), block_b)
    B_p = _round_up(B, TB)

    # Zero-padding is exact for the matmul/ReLU chain; padded rows/cols are
    # sliced off below.
    xp = jnp.zeros((B_p, D_in_p), compute_dtype).at[:B, :D_in].set(
        x2d.astype(compute_dtype))
    w1p = jnp.zeros((H_p, D_in_p), compute_dtype).at[:H, :D_in].set(
        w1.astype(compute_dtype))
    w2p = jnp.zeros((D_out_p, H_p), compute_dtype).at[:D_out, :H].set(
        w2.astype(compute_dtype))
    b1p = jnp.zeros((1, H_p), jnp.float32).at[0, :H].set(b1.astype(jnp.float32))
    b2p = jnp.zeros((1, D_out_p), jnp.float32).at[0, :D_out].set(
        b2.astype(jnp.float32))

    grid = (B_p // TB,)
    itemsize = jnp.dtype(compute_dtype).itemsize

    flops = 2 * B_p * (D_in_p * H_p + H_p * D_out_p)
    bytes_accessed = (
        B_p * D_in_p * itemsize                      # x
        + H_p * D_in_p * itemsize                    # w1
        + D_out_p * H_p * itemsize                   # w2
        + (H_p + D_out_p) * 4                        # biases
        + B_p * D_out_p * 4                          # out
    )
    # VMEM budget: resident weights/biases + double-buffered x/out tiles,
    # 2x margin, capped below v7x's 64 MiB physical VMEM.
    vmem_needed = (
        2 * (TB * D_in_p * itemsize + TB * D_out_p * 4)
        + H_p * D_in_p * itemsize + D_out_p * H_p * itemsize
        + (H_p + D_out_p) * 4
    )
    vmem_limit = int(min(max(2 * vmem_needed, 16 << 20), 60 << 20))

    out_p = pl.pallas_call(
        mlp_kernel,
        out_shape=jax.ShapeDtypeStruct((B_p, D_out_p), jnp.float32),
        grid=grid,
        in_specs=[
            pl.BlockSpec((TB, D_in_p), lambda i: (i, 0)),     # x: tiled over batch
            pl.BlockSpec((H_p, D_in_p), lambda i: (0, 0)),    # w1: resident
            pl.BlockSpec((1, H_p), lambda i: (0, 0)),         # b1: resident
            pl.BlockSpec((D_out_p, H_p), lambda i: (0, 0)),   # w2: resident
            pl.BlockSpec((1, D_out_p), lambda i: (0, 0)),     # b2: resident
        ],
        out_specs=pl.BlockSpec((TB, D_out_p), lambda i: (i, 0)),
        compiler_params=pltpu.CompilerParams(
            dimension_semantics=("parallel",),   # batch tiles split across TCs on v7x
            vmem_limit_bytes=vmem_limit,
        ),
        cost_estimate=pl.CostEstimate(
            flops=flops, transcendentals=0, bytes_accessed=bytes_accessed),
    )(xp, w1p, b1p, w2p, b2p)

    return out_p[:B, :D_out]


if __name__ == "__main__":
    # Small shapes consistent with the module: input_dim=32, hidden_dim=64, output_dim=16
    B, D_in, H, D_out = 8, 32, 64, 16

    key = jax.random.PRNGKey(0)
    k_x, k_w1, k_b1, k_w2, k_b2 = jax.random.split(key, 5)

    x = jax.random.normal(k_x, (B, D_in, 1), dtype=jnp.float32)
    mask = jnp.ones((B, D_in), dtype=jnp.float32)  # unused by forward
    w1 = jax.random.normal(k_w1, (H, D_in), dtype=jnp.float32) * 0.1
    b1 = jax.random.normal(k_b1, (H,), dtype=jnp.float32) * 0.1
    w2 = jax.random.normal(k_w2, (D_out, H), dtype=jnp.float32) * 0.1
    b2 = jax.random.normal(k_b2, (D_out,), dtype=jnp.float32) * 0.1

    out = mlp_gpt_forward(x, mask, w1, b1, w2, b2)
    out = jax.block_until_ready(out)

    # Reference in plain f32 JAX (same semantics as the PyTorch forward).
    ref = jnp.maximum(jnp.squeeze(x, -1) @ w1.T + b1, 0.0) @ w2.T + b2
    assert out.shape == (B, D_out)
    # bf16 MXU operands with f32 accumulation -> loosened tolerance.
    err = float(jnp.max(jnp.abs(out - ref)))
    assert jnp.allclose(out, ref, atol=2e-2, rtol=2e-2), f"max abs err = {err}"

    print("KERNEL_OK")
</pallas_src>

<mosaic_0001>
module attributes {stable_mosaic.version = 11 : i64} {
  func.func @mlp_kernel(%arg0: i32, %arg1: memref<16x128xbf16, #tpu.memory_space<vmem>>, %arg2: memref<128x128xbf16, #tpu.memory_space<vmem>>, %arg3: memref<1x128xf32, #tpu.memory_space<vmem>>, %arg4: memref<128x128xbf16, #tpu.memory_space<vmem>>, %arg5: memref<1x128xf32, #tpu.memory_space<vmem>>, %arg6: memref<16x128xf32, #tpu.memory_space<vmem>>) attributes {dimension_semantics = [#tpu.dimension_semantics<parallel>], iteration_bounds = array<i64: 1>, scalar_prefetch = 0 : i64, scratch_operands = 0 : i64, tpu.core_type = #tpu.core_type<tc>, window_params = [{transform_indices = @transform_0, window_bounds = array<i64: 16, 128>}, {pipeline_mode = #tpu.pipeline_mode<synchronous>, transform_indices = @transform_1, window_bounds = array<i64: 128, 128>}, {pipeline_mode = #tpu.pipeline_mode<synchronous>, transform_indices = @transform_2, window_bounds = array<i64: 1, 128>}, {pipeline_mode = #tpu.pipeline_mode<synchronous>, transform_indices = @transform_3, window_bounds = array<i64: 128, 128>}, {pipeline_mode = #tpu.pipeline_mode<synchronous>, transform_indices = @transform_4, window_bounds = array<i64: 1, 128>}, {transform_indices = @transform_5, window_bounds = array<i64: 16, 128>}]} {
    %c0 = arith.constant 0 : index
    %c0_0 = arith.constant 0 : index
    %0 = vector.load %arg1[%c0, %c0_0] : memref<16x128xbf16, #tpu.memory_space<vmem>>, vector<16x128xbf16>
    %c0_1 = arith.constant 0 : index
    %c0_2 = arith.constant 0 : index
    %1 = vector.load %arg2[%c0_1, %c0_2] : memref<128x128xbf16, #tpu.memory_space<vmem>>, vector<128x128xbf16>
    %cst = arith.constant dense<0.000000e+00> : vector<16x128xf32>
    %2 = tpu.matmul %0, %1, %cst {dimension_numbers = #tpu.dot_dimension_numbers<[1], [1], [0], [0], [0, 0, 1, 0], [], []>} : vector<16x128xbf16>, vector<128x128xbf16>, vector<16x128xf32> -> vector<16x128xf32>
    %c0_3 = arith.constant 0 : index
    %c0_4 = arith.constant 0 : index
    %3 = vector.load %arg3[%c0_3, %c0_4] : memref<1x128xf32, #tpu.memory_space<vmem>>, vector<1x128xf32>
    %4 = vector.broadcast %3 : vector<1x128xf32> to vector<16x128xf32>
    %5 = arith.addf %2, %4 : vector<16x128xf32>
    %cst_5 = arith.constant 0.000000e+00 : f32
    %6 = vector.broadcast %cst_5 : f32 to vector<16x128xf32>
    %7 = arith.maximumf %5, %6 : vector<16x128xf32>
    %8 = arith.truncf %7 : vector<16x128xf32> to vector<16x128xbf16>
    %c0_6 = arith.constant 0 : index
    %c0_7 = arith.constant 0 : index
    %9 = vector.load %arg4[%c0_6, %c0_7] : memref<128x128xbf16, #tpu.memory_space<vmem>>, vector<128x128xbf16>
    %cst_8 = arith.constant dense<0.000000e+00> : vector<16x128xf32>
    %10 = tpu.matmul %8, %9, %cst_8 {dimension_numbers = #tpu.dot_dimension_numbers<[1], [1], [0], [0], [0, 0, 1, 0], [], []>} : vector<16x128xbf16>, vector<128x128xbf16>, vector<16x128xf32> -> vector<16x128xf32>
    %c0_9 = arith.constant 0 : index
    %c0_10 = arith.constant 0 : index
    %11 = vector.load %arg5[%c0_9, %c0_10] : memref<1x128xf32, #tpu.memory_space<vmem>>, vector<1x128xf32>
    %12 = vector.broadcast %11 : vector<1x128xf32> to vector<16x128xf32>
    %13 = arith.addf %10, %12 : vector<16x128xf32>
    %c0_11 = arith.constant 0 : index
    %c0_12 = arith.constant 0 : index
    %14 = vector.load %arg6[%c0_11, %c0_12] : memref<16x128xf32, #tpu.memory_space<vmem>>, vector<16x128xf32>
    tpu.vector_store %arg6[%c0_11, %c0_12], %13 {strides = array<i32>} : memref<16x128xf32, #tpu.memory_space<vmem>>, vector<16x128xf32>,
    return
  }
  func.func @transform_0(%arg0: i32) -> (i32, i32) {
    %c0_i32 = arith.constant 0 : i32
    %c0_i32_0 = arith.constant 0 : i32
    return %arg0, %c0_i32 : i32, i32
  }
  func.func @transform_1(%arg0: i32) -> (i32, i32) {
    %c0_i32 = arith.constant 0 : i32
    %c0_i32_0 = arith.constant 0 : i32
    %c0_i32_1 = arith.constant 0 : i32
    return %c0_i32, %c0_i32_0 : i32, i32
  }
  func.func @transform_2(%arg0: i32) -> (i32, i32) {
    %c0_i32 = arith.constant 0 : i32
    %c0_i32_0 = arith.constant 0 : i32
    %c0_i32_1 = arith.constant 0 : i32
    return %c0_i32, %c0_i32_0 : i32, i32
  }
  func.func @transform_3(%arg0: i32) -> (i32, i32) {
    %c0_i32 = arith.constant 0 : i32
    %c0_i32_0 = arith.constant 0 : i32
    %c0_i32_1 = arith.constant 0 : i32
    return %c0_i32, %c0_i32_0 : i32, i32
  }
  func.func @transform_4(%arg0: i32) -> (i32, i32) {
    %c0_i32 = arith.constant 0 : i32
    %c0_i32_0 = arith.constant 0 : i32
    %c0_i32_1 = arith.constant 0 : i32
    return %c0_i32, %c0_i32_0 : i32, i32
  }
  func.func @transform_5(%arg0: i32) -> (i32, i32) {
    %c0_i32 = arith.constant 0 : i32
    %c0_i32_0 = arith.constant 0 : i32
    return %arg0, %c0_i32 : i32, i32
  }
}

</mosaic_0001>

<bundles_post_ra>
// kernel: mlp_gpt_forward.1
= control target key start
LH: loop header
LB: loop body
LE: loop exit
PB: predicated region body
PF: predicated region fallthrough
CT: control target
= control target key end

     0   :  { %v358_v0 = vmov 0.0   ;;  %vm359_vm0 = vmmov 0   ;;  %s453_s1 = inlined_call_operand.vmem [shape: bf16[128,128], index: 1, kind: input, shape index: {}]   ;;  %s454_s3 = inlined_call_operand.vmem [shape: bf16[128,128], index: 3, kind: input, shape index: {}]   ;;  %s455_s0 = inlined_call_operand.vmem [shape: bf16[16,128], index: 0, kind: input, shape index: {}]   ;;  %s456_s2 = inlined_call_operand.vmem [shape: f32[1,128], index: 2, kind: input, shape index: {}]   ;;  %s457_s4 = inlined_call_operand.vmem [shape: f32[1,128], index: 4, kind: input, shape index: {}]   ;;  %s458_s5 = inlined_call_operand.vmem [shape: f32[16,128], index: 5, kind: output, shape index: {}]  }
   0x1   :  { %299 = vmatprep.subr.bf16.mxu0 %v358_v0  ;;  %v341_v1 = vld [vmem:[%s453_s1] sm:$0xff]   ;;  %315 = vmatprep.mubr.msk.bf16.mxu0 %vm359_vm0, %v358_v0  ;;  %v342_v2 = vld [vmem:[%s453_s1 + $0x8] sm:$0xff]   ;;  %v343_v4 = vld [vmem:[%s453_s1 + $0x10] sm:$0xff]  }
   0x2   :  { %319 = vmatprep.subr.bf16.mxu1 %v358_v0  ;;  %335 = vmatprep.mubr.msk.bf16.mxu1 %vm359_vm0, %v358_v0  ;;  %v350_v3 = vld [vmem:[%s454_s3] sm:$0xff]   ;;  %v351_v5 = vld [vmem:[%s454_s3 + $0x8] sm:$0xff]   ;;  %v344_v6 = vld [vmem:[%s453_s1 + $0x18] sm:$0xff]  }
   0x3   :  { %300 = vmatpush3.bf16.xpose.msra.mxu0 %v341_v1  ;;  %320 = vmatpush3.bf16.xpose.msra.mxu1 %v350_v3  ;;  %v352_v7 = vld [vmem:[%s454_s3 + $0x10] sm:$0xff]   ;;  %v345_v8 = vld [vmem:[%s453_s1 + $0x20] sm:$0xff]   ;;  %v353_v9 = vld [vmem:[%s454_s3 + $0x18] sm:$0xff]  }
   0x4   :  { %301 = vmatprep.subr.bf16.mxu0 %v358_v0  ;;  %321 = vmatprep.subr.bf16.mxu1 %v358_v0  ;;  %v346_v10 = vld [vmem:[%s453_s1 + $0x28] sm:$0xff]   ;;  %v354_v11 = vld [vmem:[%s454_s3 + $0x20] sm:$0xff]   ;;  %v347_v12 = vld [vmem:[%s453_s1 + $0x30] sm:$0xff]  }
   0x5   :  { %v355_v13 = vld [vmem:[%s454_s3 + $0x28] sm:$0xff]   ;;  %v348_v14 = vld [vmem:[%s453_s1 + $0x38] sm:$0xff]   ;;  %v356_v15 = vld [vmem:[%s454_s3 + $0x30] sm:$0xff]  }
   0x6   :  { %v349_v16 = vld [vmem:[%s455_s0] sm:$0xff]   ;;  %v357_v17 = vld [vmem:[%s454_s3 + $0x38] sm:$0xff]  }
   0x7   :  { %v262_v18 = vld [vmem:[%s456_s2] ss:$0 sm:$0xff] }
   0x8   :  { %v272_v28 = vld [vmem:[%s457_s4] ss:$0 sm:$0xff] }
   0xb   :  { %302 = vmatpush3.bf16.xpose.msra.mxu0 %v342_v2  ;;  %322 = vmatpush3.bf16.xpose.msra.mxu1 %v351_v5 }
   0xc   :  { %303 = vmatprep.subr.bf16.mxu0 %v358_v0  ;;  %323 = vmatprep.subr.bf16.mxu1 %v358_v0 }
  0x13   :  { %304 = vmatpush3.bf16.xpose.msra.mxu0 %v343_v4  ;;  %324 = vmatpush3.bf16.xpose.msra.mxu1 %v352_v7 }
  0x14   :  { %305 = vmatprep.subr.bf16.mxu0 %v358_v0  ;;  %325 = vmatprep.subr.bf16.mxu1 %v358_v0 }
  0x1b   :  { %306 = vmatpush3.bf16.xpose.msra.mxu0 %v344_v6  ;;  %326 = vmatpush3.bf16.xpose.msra.mxu1 %v353_v9 }
  0x1c   :  { %307 = vmatprep.subr.bf16.mxu0 %v358_v0  ;;  %327 = vmatprep.subr.bf16.mxu1 %v358_v0 }
  0x23   :  { %308 = vmatpush3.bf16.xpose.msra.mxu0 %v345_v8  ;;  %328 = vmatpush3.bf16.xpose.msra.mxu1 %v354_v11 }
  0x24   :  { %309 = vmatprep.subr.bf16.mxu0 %v358_v0  ;;  %329 = vmatprep.subr.bf16.mxu1 %v358_v0 }
  0x2b   :  { %310 = vmatpush3.bf16.xpose.msra.mxu0 %v346_v10  ;;  %330 = vmatpush3.bf16.xpose.msra.mxu1 %v355_v13 }
  0x2c   :  { %311 = vmatprep.subr.bf16.mxu0 %v358_v0  ;;  %331 = vmatprep.subr.bf16.mxu1 %v358_v0 }
  0x33   :  { %312 = vmatpush3.bf16.xpose.msra.mxu0 %v347_v12  ;;  %332 = vmatpush3.bf16.xpose.msra.mxu1 %v356_v15 }
  0x34   :  { %313 = vmatprep.subr.bf16.mxu0 %v358_v0  ;;  %333 = vmatprep.subr.bf16.mxu1 %v358_v0 }
  0x3b   :  { %314 = vmatpush3.bf16.xpose.msra.mxu0 %v348_v14  ;;  %334 = vmatpush3.bf16.xpose.msra.mxu1 %v357_v17 }
  0x42   :  { %316 = vmatmul.mubr.bf16.vlgmr.msra.gmra.mrb[0].mxu0 %v349_v16 }
 0x115   :  { %v134_v19 = vpop.f32.mrb[0].mxu0 }
 0x116   :  { %v135_v20 = vadd.f32 %v262_v18, %v134_v19  ;;  %v317_v21 = vpop.f32.mrb[1].mxu0 }
 0x117   :  { %v137_v22 = vpop.f32.mrb[2].mxu0 }
 0x118   :  { %v138_v23 = vadd.f32 %v262_v18, %v137_v22  ;;  %v318_v24 = vpop.f32.mrb[3].mxu0  ;;  %v141_v25 = vmax.f32 %v135_v20, 0.0 }
 0x11a   :  { %v142_v26 = vmax.f32 %v138_v23, 0.0 }
 0x11c   :  { %v143_v27 = vpack.c.bf16 %v142_v26, %v141_v25 }
 0x11e   :  { %336 = vmatmul.mubr.bf16.vlgmr.msra.gmra.mrb[0].mxu1 %v143_v27 }
 0x1f1   :  { %v249_v29 = vpop.f32.mrb[0].mxu1 }
 0x1f2   :  { %v250_v30 = vadd.f32 %v272_v28, %v249_v29  ;;  %v337_v31 = vpop.f32.mrb[1].mxu1 }
 0x1f3   :  { %v252_v32 = vpop.f32.mrb[2].mxu1 }
 0x1f4   :  { %256 = vst [vmem:[%s458_s5] sm:$0xff] %v250_v30  ;;  %v253_v33 = vadd.f32 %v272_v28, %v252_v32  ;;  %v338_v34 = vpop.f32.mrb[3].mxu1 }
 0x1f6   :  { %257 = vst [vmem:[%s458_s5 + $0x8] sm:$0xff] %v253_v33 }

</bundles_post_ra>
